<compile_context>
chip_gen: v6e
topology: v6e:2x2x1
jax: 0.10.0
libtpu: 0.0.40
codegen_flags: <defaults>
</compile_context>

<pallas_src>
import jax
import jax.numpy as jnp
from jax.experimental import pallas as pl
from jax.experimental.pallas import tpu as pltpu


# --------------------------------------------------------------------------
# Kernel 1: hypernet embedding + value MLP + per-batch-element mean
#   x_ref   : (N, TB, D) f32   (neighbor-major)
#   outputs : emb (N, TB, H), val (N, TB, H), mean (TB, H)
# --------------------------------------------------------------------------
def _encode_kernel(x_ref, w1_ref, b1_ref, w2_ref, b2_ref,
                   wv1_ref, bv1_ref, wv2_ref, bv2_ref,
                   emb_ref, val_ref, mean_ref):
    f32, bf16 = jnp.float32, jnp.bfloat16
    N, TB, D = x_ref.shape
    H = w1_ref.shape[1]
    R = N * TB

    # merge the N tile-aligned slabs into one (R, D) tile (sublane concat, TB % 8 == 0)
    x = jnp.concatenate([x_ref[n] for n in range(N)], axis=0)        # (R, D) f32
    xb = x.astype(bf16)

    # Hypernet2 layer 1: D -> H
    h1 = jnp.tanh(jnp.dot(xb, w1_ref[...], preferred_element_type=f32) + b1_ref[...])
    h1b = h1.astype(bf16)

    # Hypernet2 layer 2 (H -> D*H), split per input-feature d and fused with the
    # row-wise contraction  emb[m, h] = tanh( sum_d x[m, d] * W(x)[m, d, h] ).
    # D is tiny (adv_obs_dim) -> static unroll; avoids any minor-dim reshape.
    acc = jnp.zeros((R, H), dtype=f32)
    for d in range(D):
        hw_d = jnp.tanh(jnp.dot(h1b, w2_ref[d], preferred_element_type=f32) + b2_ref[d])
        acc = acc + x[:, d:d + 1] * hw_d
    emb = jnp.tanh(acc)                                               # (R, H) f32

    # neighbor value MLP
    v1 = jnp.tanh(jnp.dot(emb.astype(bf16), wv1_ref[...],
                          preferred_element_type=f32) + bv1_ref[...])
    val = jnp.tanh(jnp.dot(v1.astype(bf16), wv2_ref[...],
                           preferred_element_type=f32) + bv2_ref[...])

    # write per-neighbor slabs + accumulate the per-batch-element mean (pure
    # elementwise adds over contiguous (TB, H) slabs -- no reshape needed)
    msum = jnp.zeros((TB, H), dtype=f32)
    for n in range(N):
        e_n = emb[n * TB:(n + 1) * TB, :]
        emb_ref[n, :, :] = e_n
        val_ref[n, :, :] = val[n * TB:(n + 1) * TB, :]
        msum = msum + e_n
    mean_ref[...] = msum * (1.0 / N)


# --------------------------------------------------------------------------
# Kernel 2: attention MLP + per-batch softmax over neighbors + weighted sum
#   emb / val / mean_repeat refs : (N, TB, H) f32 ;  out : (TB, H)
# --------------------------------------------------------------------------
def _attention_kernel(emb_ref, val_ref, mr_ref,
                      wa1e_ref, wa1m_ref, ba1_ref,
                      wa2_ref, ba2_ref, wa3_ref, ba3_ref,
                      out_ref):
    f32, bf16 = jnp.float32, jnp.bfloat16
    N, TB, H = emb_ref.shape

    emb = jnp.concatenate([emb_ref[n] for n in range(N)], axis=0)     # (R, H)
    mr = jnp.concatenate([mr_ref[n] for n in range(N)], axis=0)       # (R, H)

    # cat(emb, mean_repeat) @ Wa1 done as a split matmul (no lane concat needed)
    a1 = jnp.tanh(jnp.dot(emb.astype(bf16), wa1e_ref[...], preferred_element_type=f32)
                  + jnp.dot(mr.astype(bf16), wa1m_ref[...], preferred_element_type=f32)
                  + ba1_ref[...])
    a2 = jnp.tanh(jnp.dot(a1.astype(bf16), wa2_ref[...], preferred_element_type=f32)
                  + ba2_ref[...])
    # final H -> 1 layer as a lane reduction (avoids a degenerate width-1 matmul)
    logits = jnp.sum(a2 * wa3_ref[...], axis=-1, keepdims=True) + ba3_ref[...]   # (R, 1)

    # softmax over the N neighbors of each batch element: slabs of TB contiguous rows
    slabs = [logits[n * TB:(n + 1) * TB, :] for n in range(N)]        # each (TB, 1)
    mx = slabs[0]
    for n in range(1, N):
        mx = jnp.maximum(mx, slabs[n])
    exps = [jnp.exp(s - mx) for s in slabs]
    denom = exps[0]
    for n in range(1, N):
        denom = denom + exps[n]
    inv = 1.0 / denom                                                 # (TB, 1) f32

    acc = jnp.zeros((TB, H), dtype=f32)
    for n in range(N):
        acc = acc + (exps[n] * inv) * val_ref[n]
    out_ref[...] = acc


# --------------------------------------------------------------------------
# Wrapper
# --------------------------------------------------------------------------
def _choose_tile_b(b_padded, n, target_rows=512):
    """Largest multiple-of-8 tile dividing the (padded) batch, ~target rows/tile."""
    cap = max(8, (target_rows // max(n, 1) // 8) * 8)
    best = 8
    for tb in range(8, min(b_padded, cap) + 1, 8):
        if b_padded % tb == 0:
            best = tb
    return best


def adv_encoder_attention(obs, params, *, adv_obs_size, num_adv_obs, adv_obs_dim,
                          neighbor_hidden_size, tile_b=None):
    """obs: [E, A, obs_dim] f32  ->  final neighborhood embedding [E, A, H] f32."""
    E, A, _ = obs.shape
    B = E * A
    N, D, H = num_adv_obs, adv_obs_dim, neighbor_hidden_size

    # slice + neighbor-major layout: x3[n, b, :] = features of neighbor n of batch elem b
    x = obs[:, :, adv_obs_size:adv_obs_size + N * D].astype(jnp.float32)
    x3 = x.reshape(B, N, D).transpose(1, 0, 2)                         # (N, B, D)

    # pad batch to a sublane multiple so every slab is (8,128)-tile aligned
    Bp = ((B + 7) // 8) * 8
    if Bp != B:
        x3 = jnp.pad(x3, ((0, 0), (0, Bp - B), (0, 0)))

    TB = tile_b if tile_b is not None else _choose_tile_b(Bp, N)
    assert Bp % TB == 0, "tile_b must divide the (padded) batch size"
    assert TB % 8 == 0, "tile_b must be a multiple of 8"
    n_tiles = Bp // TB

    bf16 = jnp.bfloat16
    # Weights as [in, out] (torch W transposed), bf16 for MXU; biases stay f32.
    w1 = params['hw1'].astype(bf16)                                        # (D, H)
    b1 = params['hb1']                                                     # (1, H)
    w2 = params['hw2'].reshape(H, D, H).transpose(1, 0, 2).astype(bf16)    # (D, H, H)
    b2 = params['hb2'].reshape(D, 1, H)                                    # (D, 1, H)
    wv1, bv1 = params['vw1'].astype(bf16), params['vb1']
    wv2, bv2 = params['vw2'].astype(bf16), params['vb2']
    wa1e = params['aw1'][:H].astype(bf16)
    wa1m = params['aw1'][H:].astype(bf16)
    ba1 = params['ab1']
    wa2, ba2 = params['aw2'].astype(bf16), params['ab2']
    wa3, ba3 = params['aw3'], params['ab3']                                # (1,H), (1,1) f32

    c2 = lambda t: (0, 0)
    c3 = lambda t: (0, 0, 0)
    row_tiled = lambda t: (t, 0)
    nb_tiled = lambda t: (0, t, 0)

    emb3, val3, mean = pl.pallas_call(
        _encode_kernel,
        out_shape=(jax.ShapeDtypeStruct((N, Bp, H), jnp.float32),
                   jax.ShapeDtypeStruct((N, Bp, H), jnp.float32),
                   jax.ShapeDtypeStruct((Bp, H), jnp.float32)),
        grid=(n_tiles,),
        in_specs=[
            pl.BlockSpec((N, TB, D), nb_tiled),     # x (pipelined over batch tiles)
            pl.BlockSpec((D, H), c2),               # hypernet W1 (VMEM-resident)
            pl.BlockSpec((1, H), c2),
            pl.BlockSpec((D, H, H), c3),            # hypernet W2, split per d
            pl.BlockSpec((D, 1, H), c3),
            pl.BlockSpec((H, H), c2),               # value MLP
            pl.BlockSpec((1, H), c2),
            pl.BlockSpec((H, H), c2),
            pl.BlockSpec((1, H), c2),
        ],
        out_specs=(pl.BlockSpec((N, TB, H), nb_tiled),
                   pl.BlockSpec((N, TB, H), nb_tiled),
                   pl.BlockSpec((TB, H), row_tiled)),
        compiler_params=pltpu.CompilerParams(dimension_semantics=("parallel",)),
    )(x3, w1, b1, w2, b2, wv1, bv1, wv2, bv2)

    # torch `.repeat(N, 1)` semantics (tile, NOT repeat_interleave): attention row
    # m = b*N + n pairs with mean[(b*N + n) % B].  This mixes batch elements across
    # the whole batch, hence the two-pass structure; gathered here to neighbor-major.
    gather_idx = (jnp.arange(Bp)[None, :] * N + jnp.arange(N)[:, None]) % B   # (N, Bp)
    mr3 = mean[gather_idx]                                                    # (N, Bp, H)

    out = pl.pallas_call(
        _attention_kernel,
        out_shape=jax.ShapeDtypeStruct((Bp, H), jnp.float32),
        grid=(n_tiles,),
        in_specs=[
            pl.BlockSpec((N, TB, H), nb_tiled),     # emb
            pl.BlockSpec((N, TB, H), nb_tiled),     # values
            pl.BlockSpec((N, TB, H), nb_tiled),     # mean_repeat
            pl.BlockSpec((H, H), c2),               # attention MLP (VMEM-resident)
            pl.BlockSpec((H, H), c2),
            pl.BlockSpec((1, H), c2),
            pl.BlockSpec((H, H), c2),
            pl.BlockSpec((1, H), c2),
            pl.BlockSpec((1, H), c2),               # final-layer weight row
            pl.BlockSpec((1, 1), c2),               # final-layer bias
        ],
        out_specs=pl.BlockSpec((TB, H), row_tiled),
        compiler_params=pltpu.CompilerParams(dimension_semantics=("parallel",)),
    )(emb3, val3, mr3, wa1e, wa1m, ba1, wa2, ba2, wa3, ba3)

    return out[:B].reshape(E, A, H)


# --------------------------------------------------------------------------
# Plain-JAX reference (mirrors the kernel's bf16 MXU operands / f32 accumulate)
# --------------------------------------------------------------------------
def adv_encoder_attention_ref(obs, params, *, adv_obs_size, num_adv_obs,
                              adv_obs_dim, neighbor_hidden_size):
    E, A, _ = obs.shape
    B, N, D, H = E * A, num_adv_obs, adv_obs_dim, neighbor_hidden_size
    M = B * N
    x = obs[:, :, adv_obs_size:adv_obs_size + N * D].reshape(M, D).astype(jnp.float32)

    bf, f32 = jnp.bfloat16, jnp.float32
    bdot = lambda a, w: jnp.dot(a.astype(bf), w.astype(bf), preferred_element_type=f32)

    h1 = jnp.tanh(bdot(x, params['hw1']) + params['hb1'])
    hw = jnp.tanh(bdot(h1, params['hw2']) + params['hb2'])            # (M, D*H)
    emb = jnp.tanh(jnp.sum(x[:, :, None] * hw.reshape(M, D, H), axis=1))
    v1 = jnp.tanh(bdot(emb, params['vw1']) + params['vb1'])
    val = jnp.tanh(bdot(v1, params['vw2']) + params['vb2'])
    mean = jnp.mean(emb.reshape(B, N, H), axis=1)
    mean_rep = jnp.tile(mean, (N, 1))                                  # torch .repeat
    a1 = jnp.tanh(bdot(emb, params['aw1'][:H]) + bdot(mean_rep, params['aw1'][H:])
                  + params['ab1'])
    a2 = jnp.tanh(bdot(a1, params['aw2']) + params['ab2'])
    logits = jnp.sum(a2 * params['aw3'], axis=-1, keepdims=True) + params['ab3']
    w = jax.nn.softmax(logits.reshape(B, N), axis=1)
    out = jnp.sum(val.reshape(B, N, H) * w[:, :, None], axis=1)
    return out.reshape(E, A, H)


def init_params(key, adv_obs_dim, neighbor_hidden_size):
    """torch nn.Linear default init: U(-1/sqrt(fan_in), 1/sqrt(fan_in)); W stored [in, out]."""
    D, H = adv_obs_dim, neighbor_hidden_size
    ks = jax.random.split(key, 14)

    def lin(kw, kb, fan_in, fan_out):
        bound = 1.0 / float(jnp.sqrt(jnp.float32(fan_in)))
        w = jax.random.uniform(kw, (fan_in, fan_out), minval=-bound, maxval=bound,
                               dtype=jnp.float32)
        b = jax.random.uniform(kb, (1, fan_out), minval=-bound, maxval=bound,
                               dtype=jnp.float32)
        return w, b

    hw1, hb1 = lin(ks[0], ks[1], D, H)
    hw2, hb2 = lin(ks[2], ks[3], H, D * H)
    vw1, vb1 = lin(ks[4], ks[5], H, H)
    vw2, vb2 = lin(ks[6], ks[7], H, H)
    aw1, ab1 = lin(ks[8], ks[9], 2 * H, H)
    aw2, ab2 = lin(ks[10], ks[11], H, H)
    aw3, ab3 = lin(ks[12], ks[13], H, 1)
    return dict(hw1=hw1, hb1=hb1, hw2=hw2, hb2=hb2,
                vw1=vw1, vb1=vb1, vw2=vw2, vb2=vb2,
                aw1=aw1, ab1=ab1, aw2=aw2, ab2=ab2,
                aw3=aw3.T, ab3=ab3)        # aw3 stored as (1, H) row


if __name__ == "__main__":
    # Small shapes consistent with the module:
    #   obs [E, A, obs_dim], batch_size = E*A, adv_obs_dim D, hidden H, num_adv_obs N.
    E, A = 4, 8
    D = 6                      # adv_obs_dim
    H = 32                     # neighbor_hidden_size
    N = 4                      # num_adv_obs
    adv_obs_size = 18          # self-obs prefix skipped by the slice
    obs_dim = adv_obs_size + N * D + 6   # a few unused trailing features

    key = jax.random.PRNGKey(0)
    k_obs, k_par = jax.random.split(key)
    obs = jax.random.normal(k_obs, (E, A, obs_dim), dtype=jnp.float32)
    params = init_params(k_par, D, H)

    # tile_b=8 -> 4 grid steps, exercising the batch-tiled / pipelined path.
    out = adv_encoder_attention(obs, params, adv_obs_size=adv_obs_size,
                                num_adv_obs=N, adv_obs_dim=D,
                                neighbor_hidden_size=H, tile_b=8)
    out = jax.block_until_ready(out)

    ref = adv_encoder_attention_ref(obs, params, adv_obs_size=adv_obs_size,
                                    num_adv_obs=N, adv_obs_dim=D,
                                    neighbor_hidden_size=H)
    assert out.shape == (E, A, H)
    assert jnp.allclose(out, ref, atol=5e-3, rtol=5e-3), \
        f"max abs diff {float(jnp.max(jnp.abs(out - ref)))}"
    print("KERNEL_OK")
</pallas_src>

<mosaic_0001>
module attributes {stable_mosaic.version = 11 : i64} {
  func.func @_encode_kernel(%arg0: i32, %arg1: memref<4x8x6xf32, #tpu.memory_space<vmem>>, %arg2: memref<6x32xbf16, #tpu.memory_space<vmem>>, %arg3: memref<1x32xf32, #tpu.memory_space<vmem>>, %arg4: memref<6x32x32xbf16, #tpu.memory_space<vmem>>, %arg5: memref<6x1x32xf32, #tpu.memory_space<vmem>>, %arg6: memref<32x32xbf16, #tpu.memory_space<vmem>>, %arg7: memref<1x32xf32, #tpu.memory_space<vmem>>, %arg8: memref<32x32xbf16, #tpu.memory_space<vmem>>, %arg9: memref<1x32xf32, #tpu.memory_space<vmem>>, %arg10: memref<4x8x32xf32, #tpu.memory_space<vmem>>, %arg11: memref<4x8x32xf32, #tpu.memory_space<vmem>>, %arg12: memref<8x32xf32, #tpu.memory_space<vmem>>) attributes {dimension_semantics = [#tpu.dimension_semantics<parallel>], iteration_bounds = array<i64: 4>, scalar_prefetch = 0 : i64, scratch_operands = 0 : i64, tpu.core_type = #tpu.core_type<tc>, window_params = [{transform_indices = @transform_0, window_bounds = array<i64: 4, 8, 6>}, {pipeline_mode = #tpu.pipeline_mode<synchronous>, transform_indices = @transform_1, window_bounds = array<i64: 6, 32>}, {pipeline_mode = #tpu.pipeline_mode<synchronous>, transform_indices = @transform_2, window_bounds = array<i64: 1, 32>}, {pipeline_mode = #tpu.pipeline_mode<synchronous>, transform_indices = @transform_3, window_bounds = array<i64: 6, 32, 32>}, {pipeline_mode = #tpu.pipeline_mode<synchronous>, transform_indices = @transform_4, window_bounds = array<i64: 6, 1, 32>}, {pipeline_mode = #tpu.pipeline_mode<synchronous>, transform_indices = @transform_5, window_bounds = array<i64: 32, 32>}, {pipeline_mode = #tpu.pipeline_mode<synchronous>, transform_indices = @transform_6, window_bounds = array<i64: 1, 32>}, {pipeline_mode = #tpu.pipeline_mode<synchronous>, transform_indices = @transform_7, window_bounds = array<i64: 32, 32>}, {pipeline_mode = #tpu.pipeline_mode<synchronous>, transform_indices = @transform_8, window_bounds = array<i64: 1, 32>}, {transform_indices = @transform_9, window_bounds = array<i64: 4, 8, 32>}, {transform_indices = @transform_10, window_bounds = array<i64: 4, 8, 32>}, {transform_indices = @transform_11, window_bounds = array<i64: 8, 32>}]} {
    %c0 = arith.constant 0 : index
    %c0_0 = arith.constant 0 : index
    %c0_1 = arith.constant 0 : index
    %0 = vector.load %arg1[%c0, %c0_0, %c0_1] : memref<4x8x6xf32, #tpu.memory_space<vmem>>, vector<1x8x6xf32>
    %1 = vector.shape_cast %0 : vector<1x8x6xf32> to vector<8x6xf32>
    %c1 = arith.constant 1 : index
    %c0_2 = arith.constant 0 : index
    %c0_3 = arith.constant 0 : index
    %2 = vector.load %arg1[%c1, %c0_2, %c0_3] : memref<4x8x6xf32, #tpu.memory_space<vmem>>, vector<1x8x6xf32>
    %3 = vector.shape_cast %2 : vector<1x8x6xf32> to vector<8x6xf32>
    %c2 = arith.constant 2 : index
    %c0_4 = arith.constant 0 : index
    %c0_5 = arith.constant 0 : index
    %4 = vector.load %arg1[%c2, %c0_4, %c0_5] : memref<4x8x6xf32, #tpu.memory_space<vmem>>, vector<1x8x6xf32>
    %5 = vector.shape_cast %4 : vector<1x8x6xf32> to vector<8x6xf32>
    %c3 = arith.constant 3 : index
    %c0_6 = arith.constant 0 : index
    %c0_7 = arith.constant 0 : index
    %6 = vector.load %arg1[%c3, %c0_6, %c0_7] : memref<4x8x6xf32, #tpu.memory_space<vmem>>, vector<1x8x6xf32>
    %7 = vector.shape_cast %6 : vector<1x8x6xf32> to vector<8x6xf32>
    %8 = tpu.concatenate %1, %3, %5, %7 in 0 : vector<8x6xf32>, vector<8x6xf32>, vector<8x6xf32>, vector<8x6xf32> -> vector<32x6xf32>
    %9 = arith.truncf %8 : vector<32x6xf32> to vector<32x6xbf16>
    %c0_8 = arith.constant 0 : index
    %c0_9 = arith.constant 0 : index
    %10 = vector.load %arg2[%c0_8, %c0_9] : memref<6x32xbf16, #tpu.memory_space<vmem>>, vector<6x32xbf16>
    %cst = arith.constant dense<0.000000e+00> : vector<32x32xf32>
    %11 = tpu.matmul %9, %10, %cst {dimension_numbers = #tpu.dot_dimension_numbers<[1], [0], [0], [1], [0, 0, 1, 1], [], []>} : vector<32x6xbf16>, vector<6x32xbf16>, vector<32x32xf32> -> vector<32x32xf32>
    %c0_10 = arith.constant 0 : index
    %c0_11 = arith.constant 0 : index
    %12 = vector.load %arg3[%c0_10, %c0_11] : memref<1x32xf32, #tpu.memory_space<vmem>>, vector<1x32xf32>
    %13 = vector.broadcast %12 : vector<1x32xf32> to vector<32x32xf32>
    %14 = arith.addf %11, %13 : vector<32x32xf32>
    %15 = math.tanh %14 : vector<32x32xf32>
    %16 = arith.truncf %15 : vector<32x32xf32> to vector<32x32xbf16>
    %cst_12 = arith.constant 0.000000e+00 : f32
    %17 = vector.broadcast %cst_12 : f32 to vector<32x32xf32>
    %c0_13 = arith.constant 0 : index
    %c0_14 = arith.constant 0 : index
    %c0_15 = arith.constant 0 : index
    %18 = vector.load %arg4[%c0_13, %c0_14, %c0_15] : memref<6x32x32xbf16, #tpu.memory_space<vmem>>, vector<1x32x32xbf16>
    %19 = vector.shape_cast %18 : vector<1x32x32xbf16> to vector<32x32xbf16>
    %cst_16 = arith.constant dense<0.000000e+00> : vector<32x32xf32>
    %20 = tpu.matmul %16, %19, %cst_16 {dimension_numbers = #tpu.dot_dimension_numbers<[1], [0], [0], [1], [0, 0, 1, 1], [], []>} : vector<32x32xbf16>, vector<32x32xbf16>, vector<32x32xf32> -> vector<32x32xf32>
    %c0_17 = arith.constant 0 : index
    %c0_18 = arith.constant 0 : index
    %c0_19 = arith.constant 0 : index
    %21 = vector.load %arg5[%c0_17, %c0_18, %c0_19] : memref<6x1x32xf32, #tpu.memory_space<vmem>>, vector<1x1x32xf32>
    %22 = vector.shape_cast %21 : vector<1x1x32xf32> to vector<1x32xf32>
    %23 = vector.broadcast %22 : vector<1x32xf32> to vector<32x32xf32>
    %24 = arith.addf %20, %23 : vector<32x32xf32>
    %25 = math.tanh %24 : vector<32x32xf32>
    %26 = vector.extract_strided_slice %8 {offsets = [0, 0], sizes = [32, 1], strides = [1, 1]} : vector<32x6xf32> to vector<32x1xf32>
    %27 = vector.broadcast %26 : vector<32x1xf32> to vector<32x32xf32>
    %28 = arith.mulf %27, %25 : vector<32x32xf32>
    %29 = arith.addf %17, %28 : vector<32x32xf32>
    %c1_20 = arith.constant 1 : index
    %c0_21 = arith.constant 0 : index
    %c0_22 = arith.constant 0 : index
    %30 = vector.load %arg4[%c1_20, %c0_21, %c0_22] : memref<6x32x32xbf16, #tpu.memory_space<vmem>>, vector<1x32x32xbf16>
    %31 = vector.shape_cast %30 : vector<1x32x32xbf16> to vector<32x32xbf16>
    %cst_23 = arith.constant dense<0.000000e+00> : vector<32x32xf32>
    %32 = tpu.matmul %16, %31, %cst_23 {dimension_numbers = #tpu.dot_dimension_numbers<[1], [0], [0], [1], [0, 0, 1, 1], [], []>} : vector<32x32xbf16>, vector<32x32xbf16>, vector<32x32xf32> -> vector<32x32xf32>
    %c1_24 = arith.constant 1 : index
    %c0_25 = arith.constant 0 : index
    %c0_26 = arith.constant 0 : index
    %33 = vector.load %arg5[%c1_24, %c0_25, %c0_26] : memref<6x1x32xf32, #tpu.memory_space<vmem>>, vector<1x1x32xf32>
    %34 = vector.shape_cast %33 : vector<1x1x32xf32> to vector<1x32xf32>
    %35 = vector.broadcast %34 : vector<1x32xf32> to vector<32x32xf32>
    %36 = arith.addf %32, %35 : vector<32x32xf32>
    %37 = math.tanh %36 : vector<32x32xf32>
    %38 = vector.extract_strided_slice %8 {offsets = [0, 1], sizes = [32, 1], strides = [1, 1]} : vector<32x6xf32> to vector<32x1xf32>
    %39 = vector.broadcast %38 : vector<32x1xf32> to vector<32x32xf32>
    %40 = arith.mulf %39, %37 : vector<32x32xf32>
    %41 = arith.addf %29, %40 : vector<32x32xf32>
    %c2_27 = arith.constant 2 : index
    %c0_28 = arith.constant 0 : index
    %c0_29 = arith.constant 0 : index
    %42 = vector.load %arg4[%c2_27, %c0_28, %c0_29] : memref<6x32x32xbf16, #tpu.memory_space<vmem>>, vector<1x32x32xbf16>
    %43 = vector.shape_cast %42 : vector<1x32x32xbf16> to vector<32x32xbf16>
    %cst_30 = arith.constant dense<0.000000e+00> : vector<32x32xf32>
    %44 = tpu.matmul %16, %43, %cst_30 {dimension_numbers = #tpu.dot_dimension_numbers<[1], [0], [0], [1], [0, 0, 1, 1], [], []>} : vector<32x32xbf16>, vector<32x32xbf16>, vector<32x32xf32> -> vector<32x32xf32>
    %c2_31 = arith.constant 2 : index
    %c0_32 = arith.constant 0 : index
    %c0_33 = arith.constant 0 : index
    %45 = vector.load %arg5[%c2_31, %c0_32, %c0_33] : memref<6x1x32xf32, #tpu.memory_space<vmem>>, vector<1x1x32xf32>
    %46 = vector.shape_cast %45 : vector<1x1x32xf32> to vector<1x32xf32>
    %47 = vector.broadcast %46 : vector<1x32xf32> to vector<32x32xf32>
    %48 = arith.addf %44, %47 : vector<32x32xf32>
    %49 = math.tanh %48 : vector<32x32xf32>
    %50 = vector.extract_strided_slice %8 {offsets = [0, 2], sizes = [32, 1], strides = [1, 1]} : vector<32x6xf32> to vector<32x1xf32>
    %51 = vector.broadcast %50 : vector<32x1xf32> to vector<32x32xf32>
    %52 = arith.mulf %51, %49 : vector<32x32xf32>
    %53 = arith.addf %41, %52 : vector<32x32xf32>
    %c3_34 = arith.constant 3 : index
    %c0_35 = arith.constant 0 : index
    %c0_36 = arith.constant 0 : index
    %54 = vector.load %arg4[%c3_34, %c0_35, %c0_36] : memref<6x32x32xbf16, #tpu.memory_space<vmem>>, vector<1x32x32xbf16>
    %55 = vector.shape_cast %54 : vector<1x32x32xbf16> to vector<32x32xbf16>
    %cst_37 = arith.constant dense<0.000000e+00> : vector<32x32xf32>
    %56 = tpu.matmul %16, %55, %cst_37 {dimension_numbers = #tpu.dot_dimension_numbers<[1], [0], [0], [1], [0, 0, 1, 1], [], []>} : vector<32x32xbf16>, vector<32x32xbf16>, vector<32x32xf32> -> vector<32x32xf32>
    %c3_38 = arith.constant 3 : index
    %c0_39 = arith.constant 0 : index
    %c0_40 = arith.constant 0 : index
    %57 = vector.load %arg5[%c3_38, %c0_39, %c0_40] : memref<6x1x32xf32, #tpu.memory_space<vmem>>, vector<1x1x32xf32>
    %58 = vector.shape_cast %57 : vector<1x1x32xf32> to vector<1x32xf32>
    %59 = vector.broadcast %58 : vector<1x32xf32> to vector<32x32xf32>
    %60 = arith.addf %56, %59 : vector<32x32xf32>
    %61 = math.tanh %60 : vector<32x32xf32>
    %62 = vector.extract_strided_slice %8 {offsets = [0, 3], sizes = [32, 1], strides = [1, 1]} : vector<32x6xf32> to vector<32x1xf32>
    %63 = vector.broadcast %62 : vector<32x1xf32> to vector<32x32xf32>
    %64 = arith.mulf %63, %61 : vector<32x32xf32>
    %65 = arith.addf %53, %64 : vector<32x32xf32>
    %c4 = arith.constant 4 : index
    %c0_41 = arith.constant 0 : index
    %c0_42 = arith.constant 0 : index
    %66 = vector.load %arg4[%c4, %c0_41, %c0_42] : memref<6x32x32xbf16, #tpu.memory_space<vmem>>, vector<1x32x32xbf16>
    %67 = vector.shape_cast %66 : vector<1x32x32xbf16> to vector<32x32xbf16>
    %cst_43 = arith.constant dense<0.000000e+00> : vector<32x32xf32>
    %68 = tpu.matmul %16, %67, %cst_43 {dimension_numbers = #tpu.dot_dimension_numbers<[1], [0], [0], [1], [0, 0, 1, 1], [], []>} : vector<32x32xbf16>, vector<32x32xbf16>, vector<32x32xf32> -> vector<32x32xf32>
    %c4_44 = arith.constant 4 : index
    %c0_45 = arith.constant 0 : index
    %c0_46 = arith.constant 0 : index
    %69 = vector.load %arg5[%c4_44, %c0_45, %c0_46] : memref<6x1x32xf32, #tpu.memory_space<vmem>>, vector<1x1x32xf32>
    %70 = vector.shape_cast %69 : vector<1x1x32xf32> to vector<1x32xf32>
    %71 = vector.broadcast %70 : vector<1x32xf32> to vector<32x32xf32>
    %72 = arith.addf %68, %71 : vector<32x32xf32>
    %73 = math.tanh %72 : vector<32x32xf32>
    %74 = vector.extract_strided_slice %8 {offsets = [0, 4], sizes = [32, 1], strides = [1, 1]} : vector<32x6xf32> to vector<32x1xf32>
    %75 = vector.broadcast %74 : vector<32x1xf32> to vector<32x32xf32>
    %76 = arith.mulf %75, %73 : vector<32x32xf32>
    %77 = arith.addf %65, %76 : vector<32x32xf32>
    %c5 = arith.constant 5 : index
    %c0_47 = arith.constant 0 : index
    %c0_48 = arith.constant 0 : index
    %78 = vector.load %arg4[%c5, %c0_47, %c0_48] : memref<6x32x32xbf16, #tpu.memory_space<vmem>>, vector<1x32x32xbf16>
    %79 = vector.shape_cast %78 : vector<1x32x32xbf16> to vector<32x32xbf16>
    %cst_49 = arith.constant dense<0.000000e+00> : vector<32x32xf32>
    %80 = tpu.matmul %16, %79, %cst_49 {dimension_numbers = #tpu.dot_dimension_numbers<[1], [0], [0], [1], [0, 0, 1, 1], [], []>} : vector<32x32xbf16>, vector<32x32xbf16>, vector<32x32xf32> -> vector<32x32xf32>
    %c5_50 = arith.constant 5 : index
    %c0_51 = arith.constant 0 : index
    %c0_52 = arith.constant 0 : index
    %81 = vector.load %arg5[%c5_50, %c0_51, %c0_52] : memref<6x1x32xf32, #tpu.memory_space<vmem>>, vector<1x1x32xf32>
    %82 = vector.shape_cast %81 : vector<1x1x32xf32> to vector<1x32xf32>
    %83 = vector.broadcast %82 : vector<1x32xf32> to vector<32x32xf32>
    %84 = arith.addf %80, %83 : vector<32x32xf32>
    %85 = math.tanh %84 : vector<32x32xf32>
    %86 = vector.extract_strided_slice %8 {offsets = [0, 5], sizes = [32, 1], strides = [1, 1]} : vector<32x6xf32> to vector<32x1xf32>
    %87 = vector.broadcast %86 : vector<32x1xf32> to vector<32x32xf32>
    %88 = arith.mulf %87, %85 : vector<32x32xf32>
    %89 = arith.addf %77, %88 : vector<32x32xf32>
    %90 = math.tanh %89 : vector<32x32xf32>
    %91 = arith.truncf %90 : vector<32x32xf32> to vector<32x32xbf16>
    %c0_53 = arith.constant 0 : index
    %c0_54 = arith.constant 0 : index
    %92 = vector.load %arg6[%c0_53, %c0_54] : memref<32x32xbf16, #tpu.memory_space<vmem>>, vector<32x32xbf16>
    %cst_55 = arith.constant dense<0.000000e+00> : vector<32x32xf32>
    %93 = tpu.matmul %91, %92, %cst_55 {dimension_numbers = #tpu.dot_dimension_numbers<[1], [0], [0], [1], [0, 0, 1, 1], [], []>} : vector<32x32xbf16>, vector<32x32xbf16>, vector<32x32xf32> -> vector<32x32xf32>
    %c0_56 = arith.constant 0 : index
    %c0_57 = arith.constant 0 : index
    %94 = vector.load %arg7[%c0_56, %c0_57] : memref<1x32xf32, #tpu.memory_space<vmem>>, vector<1x32xf32>
    %95 = vector.broadcast %94 : vector<1x32xf32> to vector<32x32xf32>
    %96 = arith.addf %93, %95 : vector<32x32xf32>
    %97 = math.tanh %96 : vector<32x32xf32>
    %98 = arith.truncf %97 : vector<32x32xf32> to vector<32x32xbf16>
    %c0_58 = arith.constant 0 : index
    %c0_59 = arith.constant 0 : index
    %99 = vector.load %arg8[%c0_58, %c0_59] : memref<32x32xbf16, #tpu.memory_space<vmem>>, vector<32x32xbf16>
    %cst_60 = arith.constant dense<0.000000e+00> : vector<32x32xf32>
    %100 = tpu.matmul %98, %99, %cst_60 {dimension_numbers = #tpu.dot_dimension_numbers<[1], [0], [0], [1], [0, 0, 1, 1], [], []>} : vector<32x32xbf16>, vector<32x32xbf16>, vector<32x32xf32> -> vector<32x32xf32>
    %c0_61 = arith.constant 0 : index
    %c0_62 = arith.constant 0 : index
    %101 = vector.load %arg9[%c0_61, %c0_62] : memref<1x32xf32, #tpu.memory_space<vmem>>, vector<1x32xf32>
    %102 = vector.broadcast %101 : vector<1x32xf32> to vector<32x32xf32>
    %103 = arith.addf %100, %102 : vector<32x32xf32>
    %104 = math.tanh %103 : vector<32x32xf32>
    %cst_63 = arith.constant 0.000000e+00 : f32
    %105 = vector.broadcast %cst_63 : f32 to vector<8x32xf32>
    %106 = vector.extract_strided_slice %90 {offsets = [0, 0], sizes = [8, 32], strides = [1, 1]} : vector<32x32xf32> to vector<8x32xf32>
    %c0_64 = arith.constant 0 : index
    %c0_65 = arith.constant 0 : index
    %c0_66 = arith.constant 0 : index
    %107 = vector.load %arg10[%c0_64, %c0_65, %c0_66] : memref<4x8x32xf32, #tpu.memory_space<vmem>>, vector<1x8x32xf32>
    %108 = vector.shape_cast %107 : vector<1x8x32xf32> to vector<8x32xf32>
    %109 = vector.shape_cast %106 : vector<8x32xf32> to vector<1x8x32xf32>
    tpu.vector_store %arg10[%c0_64, %c0_65, %c0_66], %109 {strides = array<i32>} : memref<4x8x32xf32, #tpu.memory_space<vmem>>, vector<1x8x32xf32>,
    %110 = vector.extract_strided_slice %104 {offsets = [0, 0], sizes = [8, 32], strides = [1, 1]} : vector<32x32xf32> to vector<8x32xf32>
    %c0_67 = arith.constant 0 : index
    %c0_68 = arith.constant 0 : index
    %c0_69 = arith.constant 0 : index
    %111 = vector.load %arg11[%c0_67, %c0_68, %c0_69] : memref<4x8x32xf32, #tpu.memory_space<vmem>>, vector<1x8x32xf32>
    %112 = vector.shape_cast %111 : vector<1x8x32xf32> to vector<8x32xf32>
    %113 = vector.shape_cast %110 : vector<8x32xf32> to vector<1x8x32xf32>
    tpu.vector_store %arg11[%c0_67, %c0_68, %c0_69], %113 {strides = array<i32>} : memref<4x8x32xf32, #tpu.memory_space<vmem>>, vector<1x8x32xf32>,
    %114 = arith.addf %105, %106 : vector<8x32xf32>
    %115 = vector.extract_strided_slice %90 {offsets = [8, 0], sizes = [8, 32], strides = [1, 1]} : vector<32x32xf32> to vector<8x32xf32>
    %c1_70 = arith.constant 1 : index
    %c0_71 = arith.constant 0 : index
    %c0_72 = arith.constant 0 : index
    %116 = vector.load %arg10[%c1_70, %c0_71, %c0_72] : memref<4x8x32xf32, #tpu.memory_space<vmem>>, vector<1x8x32xf32>
    %117 = vector.shape_cast %116 : vector<1x8x32xf32> to vector<8x32xf32>
    %118 = vector.shape_cast %115 : vector<8x32xf32> to vector<1x8x32xf32>
    tpu.vector_store %arg10[%c1_70, %c0_71, %c0_72], %118 {strides = array<i32>} : memref<4x8x32xf32, #tpu.memory_space<vmem>>, vector<1x8x32xf32>,
    %119 = vector.extract_strided_slice %104 {offsets = [8, 0], sizes = [8, 32], strides = [1, 1]} : vector<32x32xf32> to vector<8x32xf32>
    %c1_73 = arith.constant 1 : index
    %c0_74 = arith.constant 0 : index
    %c0_75 = arith.constant 0 : index
    %120 = vector.load %arg11[%c1_73, %c0_74, %c0_75] : memref<4x8x32xf32, #tpu.memory_space<vmem>>, vector<1x8x32xf32>
    %121 = vector.shape_cast %120 : vector<1x8x32xf32> to vector<8x32xf32>
    %122 = vector.shape_cast %119 : vector<8x32xf32> to vector<1x8x32xf32>
    tpu.vector_store %arg11[%c1_73, %c0_74, %c0_75], %122 {strides = array<i32>} : memref<4x8x32xf32, #tpu.memory_space<vmem>>, vector<1x8x32xf32>,
    %123 = arith.addf %114, %115 : vector<8x32xf32>
    %124 = vector.extract_strided_slice %90 {offsets = [16, 0], sizes = [8, 32], strides = [1, 1]} : vector<32x32xf32> to vector<8x32xf32>
    %c2_76 = arith.constant 2 : index
    %c0_77 = arith.constant 0 : index
    %c0_78 = arith.constant 0 : index
    %125 = vector.load %arg10[%c2_76, %c0_77, %c0_78] : memref<4x8x32xf32, #tpu.memory_space<vmem>>, vector<1x8x32xf32>
    %126 = vector.shape_cast %125 : vector<1x8x32xf32> to vector<8x32xf32>
    %127 = vector.shape_cast %124 : vector<8x32xf32> to vector<1x8x32xf32>
    tpu.vector_store %arg10[%c2_76, %c0_77, %c0_78], %127 {strides = array<i32>} : memref<4x8x32xf32, #tpu.memory_space<vmem>>, vector<1x8x32xf32>,
    %128 = vector.extract_strided_slice %104 {offsets = [16, 0], sizes = [8, 32], strides = [1, 1]} : vector<32x32xf32> to vector<8x32xf32>
    %c2_79 = arith.constant 2 : index
    %c0_80 = arith.constant 0 : index
    %c0_81 = arith.constant 0 : index
    %129 = vector.load %arg11[%c2_79, %c0_80, %c0_81] : memref<4x8x32xf32, #tpu.memory_space<vmem>>, vector<1x8x32xf32>
    %130 = vector.shape_cast %129 : vector<1x8x32xf32> to vector<8x32xf32>
    %131 = vector.shape_cast %128 : vector<8x32xf32> to vector<1x8x32xf32>
    tpu.vector_store %arg11[%c2_79, %c0_80, %c0_81], %131 {strides = array<i32>} : memref<4x8x32xf32, #tpu.memory_space<vmem>>, vector<1x8x32xf32>,
    %132 = arith.addf %123, %124 : vector<8x32xf32>
    %133 = vector.extract_strided_slice %90 {offsets = [24, 0], sizes = [8, 32], strides = [1, 1]} : vector<32x32xf32> to vector<8x32xf32>
    %c3_82 = arith.constant 3 : index
    %c0_83 = arith.constant 0 : index
    %c0_84 = arith.constant 0 : index
    %134 = vector.load %arg10[%c3_82, %c0_83, %c0_84] : memref<4x8x32xf32, #tpu.memory_space<vmem>>, vector<1x8x32xf32>
    %135 = vector.shape_cast %134 : vector<1x8x32xf32> to vector<8x32xf32>
    %136 = vector.shape_cast %133 : vector<8x32xf32> to vector<1x8x32xf32>
    tpu.vector_store %arg10[%c3_82, %c0_83, %c0_84], %136 {strides = array<i32>} : memref<4x8x32xf32, #tpu.memory_space<vmem>>, vector<1x8x32xf32>,
    %137 = vector.extract_strided_slice %104 {offsets = [24, 0], sizes = [8, 32], strides = [1, 1]} : vector<32x32xf32> to vector<8x32xf32>
    %c3_85 = arith.constant 3 : index
    %c0_86 = arith.constant 0 : index
    %c0_87 = arith.constant 0 : index
    %138 = vector.load %arg11[%c3_85, %c0_86, %c0_87] : memref<4x8x32xf32, #tpu.memory_space<vmem>>, vector<1x8x32xf32>
    %139 = vector.shape_cast %138 : vector<1x8x32xf32> to vector<8x32xf32>
    %140 = vector.shape_cast %137 : vector<8x32xf32> to vector<1x8x32xf32>
    tpu.vector_store %arg11[%c3_85, %c0_86, %c0_87], %140 {strides = array<i32>} : memref<4x8x32xf32, #tpu.memory_space<vmem>>, vector<1x8x32xf32>,
    %141 = arith.addf %132, %133 : vector<8x32xf32>
    %cst_88 = arith.constant 2.500000e-01 : f32
    %142 = vector.broadcast %cst_88 : f32 to vector<8x32xf32>
    %143 = arith.mulf %141, %142 : vector<8x32xf32>
    %c0_89 = arith.constant 0 : index
    %c0_90 = arith.constant 0 : index
    %144 = vector.load %arg12[%c0_89, %c0_90] : memref<8x32xf32, #tpu.memory_space<vmem>>, vector<8x32xf32>
    tpu.vector_store %arg12[%c0_89, %c0_90], %143 {strides = array<i32>} : memref<8x32xf32, #tpu.memory_space<vmem>>, vector<8x32xf32>,
    return
  }
  func.func @transform_0(%arg0: i32) -> (i32, i32, i32) {
    %c0_i32 = arith.constant 0 : i32
    %c0_i32_0 = arith.constant 0 : i32
    %c0_i32_1 = arith.constant 0 : i32
    return %c0_i32, %arg0, %c0_i32_0 : i32, i32, i32
  }
  func.func @transform_1(%arg0: i32) -> (i32, i32) {
    %c0_i32 = arith.constant 0 : i32
    %c0_i32_0 = arith.constant 0 : i32
    %c0_i32_1 = arith.constant 0 : i32
    return %c0_i32, %c0_i32_0 : i32, i32
  }
  func.func @transform_2(%arg0: i32) -> (i32, i32) {
    %c0_i32 = arith.constant 0 : i32
    %c0_i32_0 = arith.constant 0 : i32
    %c0_i32_1 = arith.constant 0 : i32
    return %c0_i32, %c0_i32_0 : i32, i32
  }
  func.func @transform_3(%arg0: i32) -> (i32, i32, i32) {
    %c0_i32 = arith.constant 0 : i32
    %c0_i32_0 = arith.constant 0 : i32
    %c0_i32_1 = arith.constant 0 : i32
    %c0_i32_2 = arith.constant 0 : i32
    return %c0_i32, %c0_i32_0, %c0_i32_1 : i32, i32, i32
  }
  func.func @transform_4(%arg0: i32) -> (i32, i32, i32) {
    %c0_i32 = arith.constant 0 : i32
    %c0_i32_0 = arith.constant 0 : i32
    %c0_i32_1 = arith.constant 0 : i32
    %c0_i32_2 = arith.constant 0 : i32
    return %c0_i32, %c0_i32_0, %c0_i32_1 : i32, i32, i32
  }
  func.func @transform_5(%arg0: i32) -> (i32, i32) {
    %c0_i32 = arith.constant 0 : i32
    %c0_i32_0 = arith.constant 0 : i32
    %c0_i32_1 = arith.constant 0 : i32
    return %c0_i32, %c0_i32_0 : i32, i32
  }
  func.func @transform_6(%arg0: i32) -> (i32, i32) {
    %c0_i32 = arith.constant 0 : i32
    %c0_i32_0 = arith.constant 0 : i32
    %c0_i32_1 = arith.constant 0 : i32
    return %c0_i32, %c0_i32_0 : i32, i32
  }
  func.func @transform_7(%arg0: i32) -> (i32, i32) {
    %c0_i32 = arith.constant 0 : i32
    %c0_i32_0 = arith.constant 0 : i32
    %c0_i32_1 = arith.constant 0 : i32
    return %c0_i32, %c0_i32_0 : i32, i32
  }
  func.func @transform_8(%arg0: i32) -> (i32, i32) {
    %c0_i32 = arith.constant 0 : i32
    %c0_i32_0 = arith.constant 0 : i32
    %c0_i32_1 = arith.constant 0 : i32
    return %c0_i32, %c0_i32_0 : i32, i32
  }
  func.func @transform_9(%arg0: i32) -> (i32, i32, i32) {
    %c0_i32 = arith.constant 0 : i32
    %c0_i32_0 = arith.constant 0 : i32
    %c0_i32_1 = arith.constant 0 : i32
    return %c0_i32, %arg0, %c0_i32_0 : i32, i32, i32
  }
  func.func @transform_10(%arg0: i32) -> (i32, i32, i32) {
    %c0_i32 = arith.constant 0 : i32
    %c0_i32_0 = arith.constant 0 : i32
    %c0_i32_1 = arith.constant 0 : i32
    return %c0_i32, %arg0, %c0_i32_0 : i32, i32, i32
  }
  func.func @transform_11(%arg0: i32) -> (i32, i32) {
    %c0_i32 = arith.constant 0 : i32
    %c0_i32_0 = arith.constant 0 : i32
    return %arg0, %c0_i32 : i32, i32
  }
}

</mosaic_0001>

<bundles_post_ra>
// kernel: tpu_custom_call.1
= control target key start
LH: loop header
LB: loop body
LE: loop exit
PB: predicated region body
PF: predicated region fallthrough
CT: control target
= control target key end

     0   :  { %s2469_s0 = inlined_call_operand.vmem [shape: f32[4,32,6], index: 0, kind: input, shape index: {}]   ;;  %s2470_s1 = inlined_call_operand.vmem [shape: bf16[6,32], index: 1, kind: input, shape index: {}]   ;;  %s2471_s2 = inlined_call_operand.vmem [shape: f32[1,32], index: 2, kind: input, shape index: {}]   ;;  %s2472_s3 = inlined_call_operand.vmem [shape: bf16[6,32,32], index: 3, kind: input, shape index: {}]   ;;  %s2473_s4 = inlined_call_operand.vmem [shape: f32[6,1,32], index: 4, kind: input, shape index: {}]   ;;  %s2474_s5 = inlined_call_operand.vmem [shape: bf16[32,32], index: 5, kind: input, shape index: {}]   ;;  %s2475_s6 = inlined_call_operand.vmem [shape: f32[1,32], index: 6, kind: input, shape index: {}]   ;;  %s2476_s7 = inlined_call_operand.vmem [shape: bf16[32,32], index: 7, kind: input, shape index: {}]   ;;  %s2477_s8 = inlined_call_operand.vmem [shape: f32[1,32], index: 8, kind: input, shape index: {}]   ;;  %s2478_s9 = inlined_call_operand.hbm [shape: f32[4,32,32], index: 9, kind: output, shape index: {0}]   ;;  %s2479_s10 = inlined_call_operand.hbm [shape: f32[4,32,32], index: 10, kind: output, shape index: {1}]   ;;  %s2480_s11 = inlined_call_operand.hbm [shape: f32[32,32], index: 11, kind: output, shape index: {2}]  }
   0x1   :  { %2483 = sst [smem:[#allocation10_spill]] %s2469_s0 }
   0x2   :  { %2484 = sst [smem:[#allocation11_spill]] %s2470_s1 }
   0x3   :  { %2485 = sst [smem:[#allocation12_spill]] %s2471_s2 }
   0x4   :  { %2486 = sst [smem:[#allocation13_spill]] %s2472_s3 }
   0x5   :  { %2487 = sst [smem:[#allocation14_spill]] %s2473_s4 }
   0x6   :  { %17 = vsyncpa [#allocation4], 0 }
   0x7   :  { %19 = vsyncpa [#allocation4 + $0x1], 0 }
   0x8   :  { %20 = vsyncpa [#allocation6], 0 }
   0x9   :  { %22 = vsyncpa [#allocation6 + $0x1], 0  ;;  %s2085_s17 = smov 0   ;;  %s2087_s18 = smov 0  }
   0xa   :  { %s2089_s19 = smov 0   ;;  %s2091_s20 = smov 0  }
   0xb LB: > { %s2106_s21 = sadd.s32 4294967295, %s2011_s20   ;;  %s2481_s22 = sadd.s32 4294967294, %s2011_s20   ;;  %s2011_s20 = sphi %s2091_s20, %s2501_s20   ;;  %s2007_s19 = sphi %s2089_s19, %s2500_s19   ;;  %s2003_s18 = sphi %s2087_s18, %s2499_s18   ;;  %s1999_s17 = sphi %s2085_s17, %s2498_s17  }
   0xc   : > { %s2110_s23 = sadd.s32 1, %s2011_s20   ;;  %s35_s24 = sadd.s32 1, %s2007_s19 }
   0xd   : > { %s32_s25 = ssub.s32 %s2011_s20, %s2110_s23  ;;  %p42_p0 = scmp.ne.s32.totalorder %s2007_s19, %s2003_s18 }
   0xe   : > { %p33_p1 = scmp.eq.s32.totalorder %s32_s25, 0  ;;  %p43_p2 = scmp.eq.s32.totalorder %s2011_s20, 0 }
   0xf   : > { %p240_p3 = scmp.eq.s32.totalorder %s2106_s21, 3  ;;  %p245_p4 = scmp.ne.s32.totalorder %s2003_s18, %s1999_s17 }
  0x10   : > { %s2122_s26 = scalar_select %p33_p1, %s2007_s19, %s35_s24  }
  0x11   : > { %p44_p5 = por %p43_p2, %p42_p0  ;;  %p2124_p6 = por %p240_p3, %p42_p0 }
  0x12   : > { %p246_p7 = scmp.eq.s32.totalorder %s2481_s22, 3  ;;  %p1529_p9 = scmp.ge.s32.totalorder %s2011_s20, 4 }
  0x14   : > { %p2130_p8 = por %p246_p7, %p245_p4  ;;  %338 = sbr.rel (%p1529_p9) target bundleno = 39 (0x27), region = 48 }
  0x19   : > { %341 = sbr.rel (!%p44_p5) target bundleno = 39 (0x27), region = 52  ;;  %s343_s29 = sand.u32 (%p44_p5), 1, %s2007_s19  }
  0x1a   : > { %s1531_s30 = sshll.u32 (%p44_p5), %s2011_s20, 3  ;;  %s1530_s12 = sshll.u32 (%p44_p5), %s343_s29, 5 }
  0x1b   : > { %s2490_s0 = sld [smem:[#allocation10_spill]] (%p44_p5)  ;;  %s345_s16 = scalar_lea.vmem (%p44_p5), [#allocation2], %s1530_s12 }
  0x21   : > { %s347_s15 = scalar_lea.vmem %s2490_s0, %s1531_s30 }
  0x22   : > { %v382_v0 = vld [vmem:[%s347_s15] sm:$0xff] }
  0x23   : > { %v384_v1 = vld [vmem:[%s347_s15 + $0x20] sm:$0xff]  ;;  %383 = vst [vmem:[%s345_s16] sm:$0xff] %v382_v0 }
  0x24   : > { %v386_v2 = vld [vmem:[%s347_s15 + $0x40] sm:$0xff]  ;;  %385 = vst [vmem:[%s345_s16 + $0x8] sm:$0xff] %v384_v1 }
  0x25   : > { %387 = vst [vmem:[%s345_s16 + $0x10] sm:$0xff] %v386_v2  ;;  %v388_v3 = vld [vmem:[%s347_s15 + $0x60] sm:$0xff] }
  0x26   : > { %389 = vst [vmem:[%s345_s16 + $0x18] sm:$0xff] %v388_v3 }
  0x27 PF: > { %p1532_p10 = scmp.ge.s32.totalorder %s2011_s20, 1  ;;  %p394_p11 = scmp.lt.s32.totalorder %s2011_s20, 5 }
  0x29   : > { %p395_p12 = pnand %p1532_p10, %p394_p11 }
  0x2a   : > { %s2491_s1 = sld [smem:[#allocation11_spill]] (!%p395_p12)  ;;  %s2146_s29 = sand.u32 (!%p395_p12), 1, %s2003_s18  }
  0x2b   : > { %398 = sbr.rel (%p395_p12) target bundleno = 993 (0x3e1), region = 90  ;;  %s2149_s30 = sshll.u32 (!%p395_p12), %s2146_s29, 5 }
  0x2c   : > { %s403_s12 = scalar_lea.vmem (!%p395_p12), [#allocation2], %s2149_s30  ;;  %s2492_s3 = sld [smem:[#allocation13_spill]] (!%p395_p12) }
  0x2d   : > { %s2493_s2 = sld [smem:[#allocation12_spill]] (!%p395_p12)  ;;  %s2311_s15 = scalar_lea.vmem (!%p395_p12), [#allocation3], %s2149_s30 }
  0x2e   : > { %s2494_s4 = sld [smem:[#allocation14_spill]] (!%p395_p12)  ;;  %s1536_s16 = sshll.u32 (!%p395_p12), %s2146_s29, 3 }
  0x2f   : > { %s2324_s22 = scalar_lea.vmem (!%p395_p12), [#allocation7], %s1536_s16  ;;  %s2340_s0 = sshll.u32 (!%p395_p12), %s2106_s21, 7 }
  0x30   : > { %v460_v4 = vld [vmem:[%s2491_s1] sm:$0x7]  ;;  %vm475_vm0 = vcmask 1042432   ;;  %v2152_v7 = vld [vmem:[%s403_s12 + $0x8] sm:$0xff]  ;;  %vm468_vm1 = vcmask 48128   ;;  %v2154_v8 = vld [vmem:[%s403_s12 + $0x10] sm:$0xff]  ;;  %s2346_s25 = scalar_lea.hbm %s2478_s9, %s2340_s0 }
  0x31   : > { %1727 = vmatprep.subr.msk.bf16.mxu0 %vm475_vm0, %v460_v4  ;;  %v477_v5 = vsel %vm475_vm0, %v460_v4, 0  ;;  %v451_v6 = vld [vmem:[%s403_s12] sm:$0xff]  ;;  %v1539_v10 = vld [vmem:[%s403_s12 + $0x18] sm:$0xff]  ;;  %v2013_v18 = vmov 1   ;;  %v2014_v19 = vmov 0   ;;  %v2015_v20 = vmov 2  }
  0x32   : > { %1658 = vmatpush3.bf16.msra.mxu0 %v477_v5  ;;  %v458_v9 = vpack.c.bf16 %v2152_v7, %v451_v6  ;;  %v459_v11 = vpack.c.bf16 %v1539_v10, %v2154_v8  ;;  %v1799_v12 = vld [vmem:[%s2492_s3 + $0x8] sm:$0xff]   ;;  %v1800_v13 = vld [vmem:[%s2492_s3 + $0x18] sm:$0xff]   ;;  %v1801_v14 = vld [vmem:[%s2492_s3] sm:$0xff]   ;;  %1787 = vset.pattern.permute.xlu1 %v2013_v18  ;;  %v2016_v21 = vmov 3   ;;  %v2017_v22 = vmov 4   ;;  %s1370_s12 = sshll.u32 %s2311_s15, 4  ;;  %s2349_s12 = int_to_ptr.vmem [resolvable:$true] %s1370_s12 }
  0x33   : > { %1663 = vmatprep.subr.bf16.mxu1 %v1799_v12  ;;  %1671 = vmatprep.subr.bf16.mxu0 %v1800_v13  ;;  %v1802_v15 = vld [vmem:[%s2492_s3 + $0x10] sm:$0xff]   ;;  %v2173_v16 = vld [vmem:[%s2492_s3 + $0x28] sm:$0xff]   ;;  %v2178_v17 = vld [vmem:[%s2492_s3 + $0x38] sm:$0xff]   ;;  %v2018_v23 = vmov 5   ;;  %vm557_vm2 = vcmask 261120   ;;  %s1895_s14 = scalar_lea.vmem %s2349_s12, 512 }
  0x34   : > { %1659 = vmatprep.mubr.msk.bf16.mxu0 %vm468_vm1, %v458_v9  ;;  %1664 = vmatpush3.bf16.msra.mxu1 %v1799_v12  ;;  %v1540_v25 = vld [vmem:[%s2493_s2] ss:$0 sm:$0xff]  ;;  %v1806_v40 = vld [vmem:[%s2492_s3 + $0x30] sm:$0xff]   ;;  %v1807_v41 = vld [vmem:[%s2492_s3 + $0x48] sm:$0xff]   ;;  %p1896_p13 = scmp.ne.s32.totalorder %s2349_s12, %s1895_s14  ;;  %s2019_s1 = smov [#allocation3]  }
  0x35   : > { %1660 = vmatmul.mubr.msk.bf16.vlgmr.msra.gmra.mxu0 %vm468_vm1, %v459_v11  ;;  %1665 = vmatprep.subr.bf16.mxu1 %v1801_v14  ;;  %v1805_v39 = vld [vmem:[%s2492_s3 + $0x20] sm:$0xff]   ;;  %v1808_v42 = vld [vmem:[%s2492_s3 + $0x58] sm:$0xff]   ;;  %v1810_v44 = vld [vmem:[%s2492_s3 + $0x50] sm:$0xff]   ;;  %s1899_s2 = sshll.u32 %s2019_s1, 4  ;;  %s1900_s2 = int_to_ptr.vmem [resolvable:$false] %s1899_s2 }
  0x36   : > { %1672 = vmatpush3.bf16.msra.mxu0 %v1800_v13  ;;  %1786 = vset.pattern.permute.xlu0 %v2014_v19  ;;  %v1809_v43 = vld [vmem:[%s2492_s3 + $0x40] sm:$0xff]   ;;  %v1811_v45 = vld [vmem:[%s2474_s5 + $0x8] sm:$0xff]   ;;  %p1897_p0 = pnand %p1896_p13, %p2124_p6  ;;  %s1901_s3 = scalar_lea.vmem %s1900_s2, 1024 }
  0x37   : > { %1673 = vmatprep.subr.bf16.mxu0 %v1802_v15  ;;  %724 = vperm.xlu1 %1787, %v451_v6   ;;  %v1812_v46 = vld [vmem:[%s2474_s5] sm:$0xff]   ;;  %p1902_p2 = scmp.lt.s32.totalorder %s2349_s12, %s1900_s2  ;;  %p1903_p3 = scmp.lt.s32.totalorder %s1901_s3, %s1895_s14 }
  0x38   : > { %1666 = vmatpush3.bf16.msra.mxu1 %v1801_v14  ;;  %619 = vperm.xlu0 %1786, %v451_v6   ;;  %v1543_v58 = vld [vmem:[%s2494_s4] ss:$0 sm:$0xff]  ;;  %v1553_v59 = vld [vmem:[%s2494_s4 + $0x1] ss:$0 sm:$0xff]  ;;  %v1563_v13 = vld [vmem:[%s2494_s4 + $0x2] ss:$0 sm:$0xff]  ;;  %p1898_p1 = pneg %p1897_p0 }
  0x39   : > { %1679 = vmatprep.subr.bf16.mxu1 %v2173_v16  ;;  %p1904_p4 = por %p1903_p3, %p1902_p2 }
  0x3a   : > { %1674 = vmatpush3.bf16.msra.mxu0 %v1802_v15 }
  0x3b   : > { %1687 = vmatprep.subr.bf16.mxu0 %v2178_v17  ;;  %728 = vperm.xlu1 %1787, %v2152_v7   ;;  %p1905_p5 = pnand %p1904_p4, %p1898_p1 }
  0x3c   : > { %624 = vperm.xlu0 %1786, %v2152_v7  }
  0x3f   : > { %1788 = vset.pattern.permute.xlu1 %v2014_v19 }
  0x40   : > { %629 = vperm.xlu0 %1786, %v2154_v8   ;;  %634 = vperm.xlu1 %1788, %v1539_v10  }
  0x44   : > { %1789 = vset.pattern.permute.xlu0 %v2013_v18  ;;  %1790 = vset.pattern.permute.xlu1 %v2013_v18 }
  0x45   : > { %732 = vperm.xlu0 %1789, %v2154_v8   ;;  %736 = vperm.xlu1 %1790, %v1539_v10  }
  0x49   : > { %1792 = vset.pattern.permute.xlu0 %v2015_v20  ;;  %1791 = vset.pattern.permute.xlu1 %v2015_v20 }
  0x4a   : > { %830 = vperm.xlu0 %1792, %v2152_v7   ;;  %826 = vperm.xlu1 %1791, %v451_v6  }
  0x4e   : > { %1793 = vset.pattern.permute.xlu0 %v2016_v21  ;;  %834 = vperm.xlu1 %1791, %v2154_v8  }
  0x4f   : > { %928 = vperm.xlu0 %1793, %v451_v6  }
  0x52   : > { %838 = vperm.xlu1 %1791, %v1539_v10  }
  0x53   : > { %940 = vperm.xlu0 %1793, %v1539_v10  }
  0x56   : > { %1794 = vset.pattern.permute.xlu1 %v2016_v21 }
  0x57   : > { %1796 = vset.pattern.permute.xlu0 %v2017_v22  ;;  %932 = vperm.xlu1 %1794, %v2152_v7  }
  0x58   : > { %1034 = vperm.xlu0 %1796, %v2152_v7  }
  0x5b   : > { %936 = vperm.xlu1 %1794, %v2154_v8  }
  0x5c   : > { %1797 = vset.pattern.permute.xlu0 %v2018_v23 }
  0x5d   : > { %1132 = vperm.xlu0 %1797, %v451_v6  }
  0x5f   : > { %1795 = vset.pattern.permute.xlu1 %v2017_v22 }
  0x60   : > { %1030 = vperm.xlu1 %1795, %v451_v6  }
  0x61   : > { %1144 = vperm.xlu0 %1797, %v1539_v10  }
  0x64   : > { %1038 = vperm.xlu1 %1795, %v2154_v8  }
  0x68   : > { %1042 = vperm.xlu1 %1795, %v1539_v10  }
  0x6c   : > { %1798 = vset.pattern.permute.xlu1 %v2018_v23 }
  0x6d   : > { %1136 = vperm.xlu1 %1798, %v2152_v7  }
  0x71   : > { %1140 = vperm.xlu1 %1798, %v2154_v8  }
  0xb2   : > { %v2235_v47 = vpop.permute.xlu1 %724 }
  0xb3   : > { %v2245_v52 = vpop.permute.xlu0 %619 }
  0xb6   : > { %v2237_v48 = vpop.permute.xlu1 %728 }
  0xb7   : > { %v2249_v54 = vpop.permute.xlu0 %624 }
  0xbb   : > { %v2239_v49 = vpop.permute.xlu1 %634  ;;  %v2253_v56 = vpop.permute.xlu0 %629 }
  0xc0   : > { %v2241_v50 = vpop.permute.xlu1 %736  ;;  %v2263_v60 = vpop.permute.xlu0 %732 }
  0xc5   : > { %v2243_v51 = vpop.permute.xlu1 %826  ;;  %v2267_v10 = vpop.permute.xlu0 %830 }
  0xc9   : > { %v2247_v53 = vpop.permute.xlu1 %834 }
  0xcd   : > { %v2251_v55 = vpop.permute.xlu1 %838 }
  0xd2   : > { %v2255_v57 = vpop.permute.xlu1 %932 }
  0xd6   : > { %v2265_v1 = vpop.permute.xlu1 %936 }
  0xdb   : > { %v2275_v18 = vpop.permute.xlu1 %1030 }
  0xf5   : > { %v1661_v24 = vpop.f32.mrf.mxu0 }
  0xf6   : > { %v522_v30 = vadd.f32 %v1661_v24, %v1540_v25 }
  0xf7   : > { %v513_v26 = vpop.f32.mrf.mxu0 }
  0xf8   : > { %v514_v27 = vadd.f32 %v1540_v25, %v513_v26 }
  0xf9   : > { %v1662_v28 = vpop.f32.mrf.mxu0 }
  0xfa   : > { %v525_v29 = vadd.f32 %v1662_v28, %v1540_v25  ;;  %1815 = vtanh.f32 %v514_v27 }
  0xfb   : > { %v516_v31 = vpop.f32.mrf.mxu0 }
  0xfc   : > { %v517_v32 = vadd.f32 %v1540_v25, %v516_v31  ;;  %1817 = vtanh.f32 %v525_v29  ;;  %v2277_v25 = vpop.permute.xlu0 %928 }
  0xfe   : > { %1819 = vtanh.f32 %v517_v32  ;;  %v1583_v32 = vld [vmem:[%s2494_s4 + $0x4] ss:$0 sm:$0xff] }
  0xff   : > { %1821 = vtanh.f32 %v522_v30 }
 0x107   : > { %v1816_v33 = vpop.eup %1815 }
 0x109   : > { %v1818_v34 = vpop.eup %1817 }
 0x10b   : > { %v1820_v35 = vpop.eup %1819 }
 0x10c   : > { %v1822_v36 = vpop.eup %1821  ;;  %v532_v37 = vpack.c.bf16 %v1820_v35, %v1816_v33  ;;  %v2282_v33 = vpop.permute.xlu1 %1038 }
 0x10d   : > { %v533_v38 = vpack.c.bf16 %v1818_v34, %v1822_v36  ;;  %v1593_v36 = vld [vmem:[%s2494_s4 + $0x5] ss:$0 sm:$0xff] }
 0x10e   : > { %1667 = vmatprep.mubr.msk.bf16.mxu1 %vm557_vm2, %v532_v37  ;;  %1675 = vmatprep.mubr.msk.bf16.mxu0 %vm557_vm2, %v532_v37 }
 0x10f   : > { %1668 = vmatmul.mubr.msk.bf16.vlgmr.msra.gmra.mxu1 %vm557_vm2, %v533_v38  ;;  %1676 = vmatmul.mubr.msk.bf16.vlgmr.msra.gmra.mxu0 %vm557_vm2, %v533_v38 }
 0x110   : > { %1680 = vmatpush3.bf16.msra.mxu1 %v2173_v16  ;;  %1683 = vmatprep.mubr.msk.bf16.mxu1 %vm557_vm2, %v532_v37  ;;  %v1573_v16 = vld [vmem:[%s2494_s4 + $0x3] ss:$0 sm:$0xff] }
 0x111   : > { %1688 = vmatpush3.bf16.msra.mxu0 %v2178_v17  ;;  %1691 = vmatprep.mubr.msk.bf16.mxu0 %vm557_vm2, %v532_v37 }
 0x112   : > { %1681 = vmatprep.subr.bf16.mxu1 %v1805_v39  ;;  %1689 = vmatprep.subr.bf16.mxu0 %v1806_v40 }
 0x114   : > { %1682 = vmatpush3.bf16.msra.mxu1 %v1805_v39 }
 0x115   : > { %1690 = vmatpush3.bf16.msra.mxu0 %v1806_v40  ;;  %1695 = vmatprep.subr.bf16.mxu1 %v1807_v41 }
 0x116   : > { %1703 = vmatprep.subr.bf16.mxu0 %v1808_v42 }
 0x117   : > { %1684 = vmatmul.mubr.msk.bf16.vlgmr.msra.gmra.mxu1 %vm557_vm2, %v533_v38 }
 0x118   : > { %1692 = vmatmul.mubr.msk.bf16.vlgmr.msra.gmra.mxu0 %vm557_vm2, %v533_v38  ;;  %1696 = vmatpush3.bf16.msra.mxu1 %v1807_v41 }
 0x119   : > { %1699 = vmatprep.mubr.msk.bf16.mxu1 %vm557_vm2, %v532_v37  ;;  %1704 = vmatpush3.bf16.msra.mxu0 %v1808_v42 }
 0x11a   : > { %1707 = vmatprep.mubr.msk.bf16.mxu0 %vm557_vm2, %v532_v37  ;;  %1697 = vmatprep.subr.bf16.mxu1 %v1809_v43 }
 0x11b   : > { %1705 = vmatprep.subr.bf16.mxu0 %v1810_v44 }
 0x11c   : > { %1698 = vmatpush3.bf16.msra.mxu1 %v1809_v43  ;;  %v2287_v43 = vpop.permute.xlu0 %940 }
 0x11d   : > { %1706 = vmatpush3.bf16.msra.mxu0 %v1810_v44  ;;  %1711 = vmatprep.subr.bf16.mxu1 %v1811_v45 }
 0x11f   : > { %1700 = vmatmul.mubr.msk.bf16.vlgmr.msra.gmra.mxu1 %vm557_vm2, %v533_v38 }
 0x120   : > { %1708 = vmatmul.mubr.msk.bf16.vlgmr.msra.gmra.mxu0 %vm557_vm2, %v533_v38  ;;  %1712 = vmatpush3.bf16.msra.mxu1 %v1811_v45 }
 0x121   : > { %1713 = vmatprep.subr.bf16.mxu1 %v1812_v46 }
 0x124   : > { %1714 = vmatpush3.bf16.msra.mxu1 %v1812_v46 }
 0x1cf   : > { %v1669_v61 = vpop.f32.mrf.mxu1  ;;  %v1677_v62 = vpop.f32.mrf.mxu0 }
 0x1d0   : > { %v607_v63 = vadd.f32 %v1669_v61, %v1543_v58  ;;  %v713_v0 = vadd.f32 %v1677_v62, %v1553_v59 }
 0x1d1   : > { %v598_v2 = vpop.f32.mrf.mxu1  ;;  %v704_v3 = vpop.f32.mrf.mxu0 }
 0x1d2   : > { %1823 = vtanh.f32 %v607_v63  ;;  %v599_v4 = vadd.f32 %v1543_v58, %v598_v2  ;;  %v705_v5 = vadd.f32 %v1553_v59, %v704_v3  ;;  %v2289_v2 = vpop.permute.xlu1 %1042 }
 0x1d3   : > { %1825 = vtanh.f32 %v713_v0  ;;  %v1670_v6 = vpop.f32.mrf.mxu1  ;;  %v1678_v7 = vpop.f32.mrf.mxu0 }
 0x1d4   : > { %1827 = vtanh.f32 %v599_v4  ;;  %v610_v8 = vadd.f32 %v1670_v6, %v1543_v58  ;;  %v716_v9 = vadd.f32 %v1678_v7, %v1553_v59 }
 0x1d5   : > { %1829 = vtanh.f32 %v705_v5  ;;  %v601_v11 = vpop.f32.mrf.mxu1  ;;  %v707_v12 = vpop.f32.mrf.mxu0 }
 0x1d6   : > { %1831 = vtanh.f32 %v610_v8  ;;  %v602_v14 = vadd.f32 %v1543_v58, %v601_v11  ;;  %v708_v15 = vadd.f32 %v1553_v59, %v707_v12 }
 0x1d7   : > { %1833 = vtanh.f32 %v716_v9  ;;  %v1685_v17 = vpop.f32.mrf.mxu1 }
 0x1d8   : > { %1835 = vtanh.f32 %v602_v14  ;;  %v815_v19 = vadd.f32 %v1685_v17, %v1563_v13  ;;  %v1693_v20 = vpop.f32.mrf.mxu0 }
 0x1d9   : > { %1837 = vtanh.f32 %v708_v15  ;;  %v917_v21 = vadd.f32 %v1693_v20, %v1573_v16  ;;  %v806_v22 = vpop.f32.mrf.mxu1  ;;  %v1035_v15 = vpop.permute.xlu0 %1034 }
 0x1da   : > { %1839 = vtanh.f32 %v815_v19  ;;  %v807_v23 = vadd.f32 %v1563_v13, %v806_v22  ;;  %v908_v24 = vpop.f32.mrf.mxu0 }
 0x1db   : > { %1841 = vtanh.f32 %v917_v21  ;;  %v909_v26 = vadd.f32 %v1573_v16, %v908_v24  ;;  %v1686_v27 = vpop.f32.mrf.mxu1  ;;  %v1137_v24 = vpop.permute.xlu1 %1136 }
 0x1dc   : > { %1843 = vtanh.f32 %v807_v23  ;;  %v818_v28 = vadd.f32 %v1686_v27, %v1563_v13  ;;  %v1694_v29 = vpop.f32.mrf.mxu0 }
 0x1dd   : > { %1845 = vtanh.f32 %v909_v26  ;;  %v920_v30 = vadd.f32 %v1694_v29, %v1573_v16  ;;  %v809_v31 = vpop.f32.mrf.mxu1 }
 0x1de   : > { %1847 = vtanh.f32 %v818_v28  ;;  %v810_v34 = vadd.f32 %v1563_v13, %v809_v31  ;;  %v911_v35 = vpop.f32.mrf.mxu0 }
 0x1df   : > { %v1824_v37 = vpop.eup %1823  ;;  %1849 = vtanh.f32 %v920_v30  ;;  %v912_v38 = vadd.f32 %v1573_v16, %v911_v35  ;;  %v1701_v39 = vpop.f32.mrf.mxu1 }
 0x1e0   : > { %v1826_v40 = vpop.eup %1825  ;;  %1851 = vtanh.f32 %v810_v34  ;;  %v1019_v41 = vadd.f32 %v1701_v39, %v1583_v32  ;;  %v1709_v42 = vpop.f32.mrf.mxu0  ;;  %v639_v11 = vmul.f32 %v1824_v37, %v2253_v56 }
 0x1e1   : > { %v1828_v44 = vpop.eup %1827  ;;  %1853 = vtanh.f32 %v912_v38  ;;  %v1121_v45 = vadd.f32 %v1709_v42, %v1593_v36  ;;  %v1010_v46 = vpop.f32.mrf.mxu1  ;;  %v741_v12 = vmul.f32 %v1826_v40, %v2263_v60 }
 0x1e2   : > { %v1830_v58 = vpop.eup %1829  ;;  %1855 = vtanh.f32 %v1019_v41  ;;  %v1011_v59 = vadd.f32 %v1583_v32, %v1010_v46  ;;  %v1112_v61 = vpop.f32.mrf.mxu0  ;;  %v637_v21 = vmul.f32 %v1828_v44, %v2245_v52 }
 0x1e3   : > { %v1832_v62 = vpop.eup %1831  ;;  %1857 = vtanh.f32 %v1121_v45  ;;  %v1113_v63 = vadd.f32 %v1593_v36, %v1112_v61  ;;  %v1702_v0 = vpop.f32.mrf.mxu1  ;;  %v739_v22 = vmul.f32 %v1830_v58, %v2235_v47  ;;  %v745_v27 = vadd.f32 %v741_v12, %v639_v11 }
 0x1e4   : > { %v1834_v3 = vpop.eup %1833  ;;  %1859 = vtanh.f32 %v1011_v59  ;;  %v1022_v4 = vadd.f32 %v1702_v0, %v1583_v32  ;;  %v1710_v5 = vpop.f32.mrf.mxu0  ;;  %v640_v56 = vmul.f32 %v1832_v62, %v2239_v49 }
 0x1e5   : > { %v1836_v6 = vpop.eup %1835  ;;  %1861 = vtanh.f32 %v1113_v63  ;;  %v1124_v7 = vadd.f32 %v1710_v5, %v1593_v36  ;;  %v1013_v8 = vpop.f32.mrf.mxu1  ;;  %v742_v60 = vmul.f32 %v1834_v3, %v2241_v50  ;;  %v743_v47 = vadd.f32 %v739_v22, %v637_v21 }
 0x1e6   : > { %v1838_v9 = vpop.eup %1837  ;;  %1863 = vtanh.f32 %v1022_v4  ;;  %v1014_v13 = vadd.f32 %v1583_v32, %v1013_v8  ;;  %v1115_v14 = vpop.f32.mrf.mxu0  ;;  %v638_v30 = vmul.f32 %v1836_v6, %v2249_v54 }
 0x1e7   : > { %v1840_v16 = vpop.eup %1839  ;;  %1865 = vtanh.f32 %v1124_v7  ;;  %v1116_v17 = vadd.f32 %v1593_v36, %v1115_v14  ;;  %v1133_v34 = vpop.permute.xlu0 %1132  ;;  %v746_v49 = vadd.f32 %v742_v60, %v640_v56 }
 0x1e8   : > { %v1842_v19 = vpop.eup %1841  ;;  %v843_v20 = vmul.f32 %v1840_v16, %v2247_v53  ;;  %1867 = vtanh.f32 %v1014_v13  ;;  %v740_v53 = vmul.f32 %v1838_v9, %v2237_v48  ;;  %v1141_v54 = vpop.permute.xlu1 %1140 }
 0x1e9   : > { %v1844_v23 = vpop.eup %1843  ;;  %1869 = vtanh.f32 %v1116_v17  ;;  %v945_v50 = vmul.f32 %v1842_v19, %v2265_v1 }
 0x1ea   : > { %v1846_v26 = vpop.eup %1845  ;;  %v841_v28 = vmul.f32 %v1844_v23, %v2243_v51  ;;  %v847_v31 = vadd.f32 %v843_v20, %v745_v27  ;;  %v744_v39 = vadd.f32 %v740_v53, %v638_v30 }
 0x1eb   : > { %v1848_v29 = vpop.eup %1847  ;;  %v943_v42 = vmul.f32 %v1846_v26, %v2277_v25  ;;  %v1145_v62 = vpop.permute.xlu0 %1144  ;;  %v1814_v26 = vld [vmem:[%s2476_s7] sm:$0xff]  }
 0x1ec   : > { %v1850_v52 = vpop.eup %1849  ;;  %v844_v32 = vmul.f32 %v1848_v29, %v2251_v55  ;;  %v845_v38 = vadd.f32 %v841_v28, %v743_v47  ;;  %v949_v48 = vadd.f32 %v945_v50, %v847_v31  ;;  %v1598_v28 = vld [vmem:[%s2475_s6] ss:$0 sm:$0xff] }
 0x1ed   : > { %v1852_v35 = vpop.eup %1851  ;;  %v946_v46 = vmul.f32 %v1850_v52, %v2287_v43 }
 0x1ee   : > { %v1854_v36 = vpop.eup %1853  ;;  %v842_v37 = vmul.f32 %v1852_v35, %v2267_v10  ;;  %v848_v40 = vadd.f32 %v844_v32, %v746_v49  ;;  %v947_v59 = vadd.f32 %v943_v42, %v845_v38 }
 0x1ef   : > { %v1856_v51 = vpop.eup %1855  ;;  %v944_v3 = vmul.f32 %v1854_v36, %v2255_v57 }
 0x1f0   : > { %v1858_v41 = vpop.eup %1857  ;;  %v1047_v44 = vmul.f32 %v1856_v51, %v2282_v33  ;;  %v846_v45 = vadd.f32 %v842_v37, %v744_v39  ;;  %v950_v0 = vadd.f32 %v946_v46, %v848_v40 }
 0x1f1   : > { %v1860_v55 = vpop.eup %1859  ;;  %v1149_v61 = vmul.f32 %v1858_v41, %v1141_v54 }
 0x1f2   : > { %v1862_v58 = vpop.eup %1861  ;;  %v1051_v1 = vadd.f32 %v1047_v44, %v949_v48  ;;  %v1045_v10 = vmul.f32 %v1860_v55, %v2275_v18  ;;  %v948_v43 = vadd.f32 %v944_v3, %v846_v45 }
 0x1f3   : > { %v1864_v63 = vpop.eup %1863  ;;  %v1147_v6 = vmul.f32 %v1862_v58, %v1133_v34 }
 0x1f4   : > { %v1866_v4 = vpop.eup %1865  ;;  %v1048_v25 = vmul.f32 %v1864_v63, %v2289_v2  ;;  %v1153_v5 = vadd.f32 %v1149_v61, %v1051_v1  ;;  %v1049_v33 = vadd.f32 %v1045_v10, %v947_v59 }
 0x1f5   : > { %v1868_v7 = vpop.eup %1867  ;;  %v1150_v8 = vmul.f32 %v1866_v4, %v1145_v62 }
 0x1f6   : > { %v1870_v9 = vpop.eup %1869  ;;  %v1052_v11 = vadd.f32 %v1048_v25, %v950_v0  ;;  %v1046_v12 = vmul.f32 %v1868_v7, %v1035_v15  ;;  %1871 = vtanh.f32 %v1153_v5  ;;  %v1151_v18 = vadd.f32 %v1147_v6, %v1049_v33 }
 0x1f7   : > { %v1148_v13 = vmul.f32 %v1870_v9, %v1137_v24  ;;  %v1813_v24 = vld [vmem:[%s2476_s7 + $0x8] sm:$0xff]  }
 0x1f8   : > { %v1050_v14 = vadd.f32 %v1046_v12, %v948_v43  ;;  %1873 = vtanh.f32 %v1151_v18  ;;  %v1154_v16 = vadd.f32 %v1150_v8, %v1052_v11  ;;  %1719 = vmatprep.subr.bf16.mxu0 %v1813_v24 }
 0x1f9   : > { %1720 = vmatpush3.bf16.msra.mxu0 %v1813_v24 }
 0x1fa   : > { %v1152_v57 = vadd.f32 %v1148_v13, %v1050_v14  ;;  %1875 = vtanh.f32 %v1154_v16  ;;  %1721 = vmatprep.subr.bf16.mxu0 %v1814_v26 }
 0x1fc   : > { %1877 = vtanh.f32 %v1152_v57 }
 0x1fd   : > { %1722 = vmatpush3.bf16.msra.mxu0 %v1814_v26 }
 0x203   : > { %v1872_v2 = vpop.eup %1871 }
 0x204   : > { %1610 = vst.msk [vmem:[%s2311_s15 + $0x10] sm:$0xff] %vm557_vm2, %v1872_v2 }
 0x205   : > { %v1874_v15 = vpop.eup %1873 }
 0x206   : > { %1327 = vst.msk [vmem:[%s2311_s15] sm:$0xff] %vm557_vm2, %v1874_v15 }
 0x207   : > { %v1876_v17 = vpop.eup %1875 }
 0x208   : > { %1612 = vst.msk [vmem:[%s2311_s15 + $0x18] sm:$0xff] %vm557_vm2, %v1876_v17  ;;  %v1160_v22 = vpack.c.bf16 %v1876_v17, %v1872_v2 }
 0x209   : > { %v1878_v19 = vpop.eup %1877 }
 0x20a   : > { %1608 = vst.msk [vmem:[%s2311_s15 + $0x8] sm:$0xff] %vm557_vm2, %v1878_v19  ;;  %v1159_v20 = vpack.c.bf16 %v1878_v19, %v1874_v15  ;;  %v1334_v21 = vadd.f32 %v1878_v19, %v1874_v15 }
 0x20c   : > { %1715 = vmatprep.mubr.msk.bf16.mxu1 %vm557_vm2, %v1159_v20  ;;  %v1339_v23 = vadd.f32 %v1872_v2, %v1334_v21 }
 0x20d   : > { %1716 = vmatmul.mubr.msk.bf16.vlgmr.msra.gmra.mxu1 %vm557_vm2, %v1160_v22 }
 0x20e   : > { %v1344_v56 = vadd.f32 %v1876_v17, %v1339_v23 }
 0x210   : > { %v1345_v60 = vmul.f32 0.25, %v1344_v56 }
 0x212   : > { %1346 = vst.msk [vmem:[%s2324_s22] sm:$0xff] %vm557_vm2, %v1345_v60 }
 0x2cd   : > { %v1717_v27 = vpop.f32.mrf.mxu1 }
 0x2ce   : > { %v1233_v31 = vadd.f32 %v1717_v27, %v1598_v28 }
 0x2cf   : > { %v1224_v29 = vpop.f32.mrf.mxu1 }
 0x2d0   : > { %v1225_v30 = vadd.f32 %v1598_v28, %v1224_v29 }
 0x2d1   : > { %v1718_v53 = vpop.f32.mrf.mxu1 }
 0x2d2   : > { %v1236_v52 = vadd.f32 %v1718_v53, %v1598_v28  ;;  %1879 = vtanh.f32 %v1225_v30 }
 0x2d3   : > { %v1227_v47 = vpop.f32.mrf.mxu1 }
 0x2d4   : > { %v1228_v32 = vadd.f32 %v1598_v28, %v1227_v47  ;;  %1881 = vtanh.f32 %v1236_v52 }
 0x2d6   : > { %1883 = vtanh.f32 %v1228_v32 }
 0x2d7   : > { %1885 = vtanh.f32 %v1233_v31 }
 0x2df   : > { %v1880_v34 = vpop.eup %1879 }
 0x2e1   : > { %v1882_v35 = vpop.eup %1881 }
 0x2e3   : > { %v1884_v49 = vpop.eup %1883 }
 0x2e4   : > { %v1886_v36 = vpop.eup %1885  ;;  %v1243_v50 = vpack.c.bf16 %v1884_v49, %v1880_v34 }
 0x2e5   : > { %v1244_v37 = vpack.c.bf16 %v1882_v35, %v1886_v36 }
 0x2e6   : > { %1723 = vmatprep.mubr.msk.bf16.mxu0 %vm557_vm2, %v1243_v50 }
 0x2e7   : > { %1724 = vmatmul.mubr.msk.bf16.vlgmr.msra.gmra.mxu0 %vm557_vm2, %v1244_v37 }
 0x2e8   : > { %1908 = shalt.err (!%p1905_p5)
}
 0x2e9   : > { %s1909_s15 = scalar_lea.hbm %s2346_s25, 512  ;;  %s1913_s1 = scalar_lea.hbm %s2478_s9, 2048 }
 0x2ea   : > { %p1910_p7 = scmp.ne.s32.totalorder %s2346_s25, %s1909_s15  ;;  %p1914_p11 = scmp.lt.s32.totalorder %s2346_s25, %s2478_s9 }
 0x2eb   : > { %p1915_p12 = scmp.lt.s32.totalorder %s1913_s1, %s1909_s15 }
 0x2ec   : > { %p1911_p9 = pnand %p1910_p7, %p2124_p6 }
 0x2ed   : > { %p1916_p13 = por %p1915_p12, %p1914_p11 }
 0x2ee   : > { %p1912_p10 = pneg %p1911_p9 }
 0x2f0   : > { %p1917_p0 = pnand %p1916_p13, %p1912_p10 }
 0x2f2   : > { %1920 = shalt.err (!%p1917_p0)
}
 0x2f3   : > { %s2482_s2 = smov 128   ;;  %s2021_s3 = smov 512   ;;  %v1603_v38 = vld [vmem:[%s2477_s8] ss:$0 sm:$0xff] }
 0x2f4   : > { %s2022_s14 = smov 8   ;;  %s2495_s16 = scalar_lea.sflag [#allocation4], %s2146_s29 }
 0x2f5   : > { %1728 = dma.vmem_to_hbm [thread:$0]  (%p2124_p6), %s2349_s12, 512, %s2346_s25, %s2495_s16, %s2482_s2, %s2021_s3, %s2022_s14  }
 0x2f6   : > { %s442_s29 = scalar_lea.vmem [#allocation5], %s2149_s30  ;;  %s1352_s25 = sand.u32 1, %s2106_s21  }
 0x2f7   : > { %s1385_s12 = sshll.u32 %s442_s29, 4  ;;  %s1401_s15 = sshll.u32 %s2324_s22, 4  ;;  %s2392_s12 = int_to_ptr.vmem [resolvable:$true] %s1385_s12  ;;  %s2400_s15 = int_to_ptr.vmem [resolvable:$true] %s1401_s15 }
 0x2f8   : > { %s2390_s16 = scalar_lea.hbm %s2479_s10, %s2340_s0  ;;  %s2398_s4 = scalar_lea.hbm %s2480_s11, %s2340_s0 }
 0x2f9   : > { %s2403_s22 = scalar_lea.sflag [#allocation6], %s1352_s25  ;;  %s1921_s13 = scalar_lea.vmem %s2392_s12, 512 }
 0x2fa   : > { %p1922_p1 = scmp.ne.s32.totalorder %s2392_s12, %s1921_s13  ;;  %s2023_s24 = smov [#allocation5]  }
 0x2fb   : > { %s1925_s1 = sshll.u32 %s2023_s24, 4  ;;  %s1926_s1 = int_to_ptr.vmem [resolvable:$false] %s1925_s1 }
 0x2fc   : > { %p1923_p2 = pnand %p1922_p1, %p2124_p6  ;;  %s1927_s2 = scalar_lea.vmem %s1926_s1, 1024 }
 0x2fd   : > { %p1928_p4 = scmp.lt.s32.totalorder %s2392_s12, %s1926_s1  ;;  %p1929_p5 = scmp.lt.s32.totalorder %s1927_s2, %s1921_s13 }
 0x2fe   : > { %p1924_p3 = pneg %p1923_p2 }
 0x2ff   : > { %p1930_p7 = por %p1929_p5, %p1928_p4 }
 0x301   : > { %p1931_p9 = pnand %p1930_p7, %p1924_p3 }
 0x3a7   : > { %v1725_v51 = vpop.f32.mrf.mxu0 }
 0x3a8   : > { %v1317_v39 = vadd.f32 %v1725_v51, %v1603_v38 }
 0x3a9   : > { %v1308_v40 = vpop.f32.mrf.mxu0 }
 0x3aa   : > { %1887 = vtanh.f32 %v1317_v39  ;;  %v1309_v54 = vadd.f32 %v1603_v38, %v1308_v40 }
 0x3ab   : > { %v1726_v41 = vpop.f32.mrf.mxu0 }
 0x3ac   : > { %1889 = vtanh.f32 %v1309_v54  ;;  %v1320_v48 = vadd.f32 %v1726_v41, %v1603_v38 }
 0x3ad   : > { %v1311_v42 = vpop.f32.mrf.mxu0 }
 0x3ae   : > { %1891 = vtanh.f32 %v1320_v48  ;;  %v1312_v44 = vadd.f32 %v1603_v38, %v1311_v42 }
 0x3b0   : > { %1893 = vtanh.f32 %v1312_v44 }
 0x3b7   : > { %v1888_v55 = vpop.eup %1887 }
 0x3b8   : > { %1611 = vst.msk [vmem:[%s442_s29 + $0x10] sm:$0xff] %vm557_vm2, %v1888_v55 }
 0x3b9   : > { %v1890_v45 = vpop.eup %1889 }
 0x3ba   : > { %1328 = vst.msk [vmem:[%s442_s29] sm:$0xff] %vm557_vm2, %v1890_v45 }
 0x3bb   : > { %v1892_v46 = vpop.eup %1891 }
 0x3bc   : > { %1613 = vst.msk [vmem:[%s442_s29 + $0x18] sm:$0xff] %vm557_vm2, %v1892_v46 }
 0x3bd   : > { %v1894_v58 = vpop.eup %1893 }
 0x3be   : > { %1609 = vst.msk [vmem:[%s442_s29 + $0x8] sm:$0xff] %vm557_vm2, %v1894_v58 }
 0x3bf   : > { %1934 = shalt.err (!%p1931_p9)
}
 0x3c0   : > { %s1935_s0 = scalar_lea.hbm %s2390_s16, 512  ;;  %s1939_s21 = scalar_lea.hbm %s2479_s10, 2048 }
 0x3c1   : > { %p1936_p10 = scmp.ne.s32.totalorder %s2390_s16, %s1935_s0  ;;  %p1940_p13 = scmp.lt.s32.totalorder %s2390_s16, %s2479_s10 }
 0x3c2   : > { %p1941_p0 = scmp.lt.s32.totalorder %s1939_s21, %s1935_s0 }
 0x3c3   : > { %p1937_p11 = pnand %p1936_p10, %p2124_p6 }
 0x3c4   : > { %p1942_p1 = por %p1941_p0, %p1940_p13 }
 0x3c5   : > { %p1938_p12 = pneg %p1937_p11 }
 0x3c7   : > { %p1943_p2 = pnand %p1942_p1, %p1938_p12 }
 0x3c9   : > { %1946 = shalt.err (!%p1943_p2)
}
 0x3ca   : > { %s2496_s2 = smov 128   ;;  %s1947_s13 = scalar_lea.vmem %s2400_s15, 128 }
 0x3cb   : > { %1729 = dma.vmem_to_hbm [thread:$0]  (%p2124_p6), %s2392_s12, 512, %s2390_s16, %s2403_s22, %s2496_s2, %s2021_s3, %s2022_s14  }
 0x3cc   : > { %p1948_p3 = scmp.ne.s32.totalorder %s2400_s15, %s1947_s13  ;;  %s2024_s1 = smov [#allocation7]  }
 0x3cd   : > { %s1951_s0 = sshll.u32 %s2024_s1, 4  ;;  %s1952_s0 = int_to_ptr.vmem [resolvable:$false] %s1951_s0 }
 0x3ce   : > { %p1949_p4 = pnand %p1948_p3, %p2124_p6  ;;  %s1953_s29 = scalar_lea.vmem %s1952_s0, 256 }
 0x3cf   : > { %p1954_p7 = scmp.lt.s32.totalorder %s2400_s15, %s1952_s0  ;;  %p1955_p9 = scmp.lt.s32.totalorder %s1953_s29, %s1947_s13 }
 0x3d0   : > { %p1950_p5 = pneg %p1949_p4 }
 0x3d1   : > { %p1956_p10 = por %p1955_p9, %p1954_p7 }
 0x3d3   : > { %p1957_p11 = pnand %p1956_p10, %p1950_p5 }
 0x3d5   : > { %1960 = shalt.err (!%p1957_p11)
}
 0x3d6   : > { %s1961_s25 = scalar_lea.hbm %s2398_s4, 128  ;;  %s1965_s12 = scalar_lea.hbm %s2480_s11, 512 }
 0x3d7   : > { %p1962_p12 = scmp.ne.s32.totalorder %s2398_s4, %s1961_s25  ;;  %p1966_p1 = scmp.lt.s32.totalorder %s2398_s4, %s2480_s11 }
 0x3d8   : > { %p1967_p2 = scmp.lt.s32.totalorder %s1965_s12, %s1961_s25 }
 0x3d9   : > { %p1963_p13 = pnand %p1962_p12, %p2124_p6 }
 0x3da   : > { %p1968_p3 = por %p1967_p2, %p1966_p1 }
 0x3db   : > { %p1964_p0 = pneg %p1963_p13 }
 0x3dd   : > { %p1969_p4 = pnand %p1968_p3, %p1964_p0 }
 0x3df   : > { %1972 = shalt.err (!%p1969_p4)
}
 0x3e0   : > { %1730 = dma.vmem_to_hbm [thread:$0]  (%p2124_p6), %s2400_s15, 128, %s2398_s4, %s2403_s22  }
 0x3e1 PF: > { %p1744_p5 = scmp.ge.s32.totalorder %s2011_s20, 2  ;;  %s1413_s30 = sand.u32 1, %s1999_s17  }
 0x3e2   : > { %s1414_s24 = scalar_lea.sflag [#allocation4], %s1413_s30 }
 0x3e3   : > { %p1735_p7 = pnand %p1744_p5, %p2130_p8 }
 0x3e5   : > { %p1736_p9 = pneg %p1735_p7 }
 0x3e7   : > { %1990 = dma.done.wait (%p1736_p9), %s1414_s24, 512  }
 0x3e8   : > { %1992 = vsyncadd (%p1736_p9), %s1414_s24, 4294966784  ;;  %s2497_s2 = sadd.s32 4294967294, %s2011_s20  }
 0x3e9   : > { %s1422_s13 = sand.u32 1, %s2497_s2  }
 0x3ea   : > { %s1423_s27 = scalar_lea.sflag [#allocation6], %s1422_s13 }
 0x3eb   : > { %1994 = dma.done.wait (%p1736_p9), %s1423_s27, 640  }
 0x3ec   : > { %1996 = vsyncadd (%p1736_p9), %s1423_s27, 4294966656  ;;  %p25_p6 = scmp.ge.s32.totalorder %s2110_s23, 6   ;;  %s2498_s17 = smov %s2003_s18 }
 0x3ed   : > { %s2499_s18 = smov %s2007_s19  ;;  %s2500_s19 = smov %s2122_s26 }
 0x3ee   : > { %s2501_s20 = smov %s2110_s23  ;;  %27 = sbr.rel (!%p25_p6) target bundleno = 11 (0xb), region = 185 }
 0x3f3   :  { %1437 = vsyncpa [#allocation4], 1 }
 0x3f4   :  { %1439 = vsyncpa [#allocation4 + $0x1], 1 }
 0x3f5   :  { %1440 = vsyncpa [#allocation6], 1 }
 0x3f6   :  { %1442 = vsyncpa [#allocation6 + $0x1], 1 }

</bundles_post_ra>
